<compile_context>
chip_gen: v7x
topology: tpu7x:2x2x1
jax: 0.10.0
libtpu: 0.0.40
codegen_flags: <defaults>
</compile_context>

<pallas_src>
import functools

import numpy as np
import jax
import jax.numpy as jnp
from jax import lax
from jax.experimental import pallas as pl
from jax.experimental.pallas import tpu as pltpu


def _round_up(x, m):
    return ((x + m - 1) // m) * m


def _embeddings_kernel(eps, num_streams, ids_ref, table_ref, gamma_ref,
                       beta_ref, out_ref, acc_ref):
    # Blocks (transposed layout: features / vocab on sublanes, tokens on lanes)
    #   ids_ref   : (num_streams, TM) int32, per-table vocab offsets pre-added
    #   table_ref : (H, TK)           fused embedding table, K-tile k
    #   gamma_ref : (H, TM)           LayerNorm weight, lane-replicated
    #   beta_ref  : (H, TM)           LayerNorm bias,   lane-replicated
    #   out_ref   : (H, TM)
    #   acc_ref   : (H, TM) f32 scratch, accumulates over the K grid axis
    k = pl.program_id(1)
    hidden, _ = out_ref.shape
    tk = table_ref.shape[1]

    @pl.when(k == 0)
    def _():
        acc_ref[...] = jnp.zeros_like(acc_ref)

    # Transposed multi-hot: row v is 1 for every token whose (offset) id == v.
    # Boolean OR accumulation, single convert to f32 at the end.
    vocab_iota = lax.broadcasted_iota(jnp.int32, (tk, out_ref.shape[1]), 0) + k * tk
    hot = ids_ref[0:1, :] == vocab_iota
    for c in range(1, num_streams):
        hot = jnp.logical_or(hot, ids_ref[c:c + 1, :] == vocab_iota)

    # Sum of the five embedding lookups for this K-tile == one MXU matmul.
    acc_ref[...] += jnp.dot(table_ref[...], hot.astype(jnp.float32),
                            preferred_element_type=jnp.float32)

    @pl.when(k == pl.num_programs(1) - 1)
    def _():
        x = acc_ref[...]
        # LayerNorm over the hidden (sublane) axis.  Feature sums are done on
        # the MXU with a constant ones/H matrix (all result rows identical;
        # row 0 used), keeping the VPU/XLU free.  Biased variance (PyTorch).
        ones_row = jnp.full((8, hidden), 1.0 / hidden, dtype=jnp.float32)
        mean = jnp.dot(ones_row, x, preferred_element_type=jnp.float32)[0:1, :]
        centered = x - mean
        var = jnp.dot(ones_row, centered * centered,
                      preferred_element_type=jnp.float32)[0:1, :]
        y = centered * lax.rsqrt(var + eps) * gamma_ref[...] + beta_ref[...]
        # Dropout is identity in eval mode.
        out_ref[...] = y.astype(out_ref.dtype)


def prepare_bert_tcr_embedding_params(params, *, k_tile=512):
    """One-time parameter prep (hoisted out of the per-call forward).

    Concatenates the five embedding tables (word, v_gene, j_gene, type, pos)
    into one fused table with disjoint vocab offsets, zero-pads the vocab axis
    to a multiple of the K tile and stores it TRANSPOSED as (H, KPAD).  Also
    reshapes gamma/beta into columns.  Table kept f32 (bf16 is an optional
    VMEM/BW win but breaks the 1e-5 reference tolerance).
    """
    assert k_tile % 128 == 0
    tables = [jnp.asarray(params[name], jnp.float32)
              for name in ("word", "v_gene", "j_gene", "type", "pos")]
    hidden = int(tables[0].shape[1])
    sizes = [int(t.shape[0]) for t in tables]
    offsets = tuple(int(o) for o in np.cumsum([0] + sizes[:-1]))
    total = int(np.sum(sizes))
    kpad = _round_up(total, 128)
    tk = kpad if kpad <= k_tile else k_tile
    kpad = _round_up(total, tk)
    fused = jnp.concatenate(tables, axis=0)
    if kpad > total:
        fused = jnp.concatenate(
            [fused, jnp.zeros((kpad - total, hidden), jnp.float32)], axis=0)
    return {
        "table_t": jnp.asarray(fused.T),                                  # (H, KPAD)
        "gamma_col": jnp.asarray(params["gamma"], jnp.float32).reshape(hidden, 1),
        "beta_col": jnp.asarray(params["beta"], jnp.float32).reshape(hidden, 1),
        "offsets": offsets,
        "k_tile": tk,
    }


def bert_tcr_embeddings(input_ids, token_type_ids, position_ids,
                        v_gene_ids, j_gene_ids, prepared, *,
                        eps=1e-12, token_tile=512, out_dtype=jnp.float32,
                        past_key_values_length=0):
    B, S = input_ids.shape
    table_t = prepared["table_t"]
    H, kpad = table_t.shape
    tk = prepared["k_tile"]
    num_k = kpad // tk
    offsets = prepared["offsets"]

    if position_ids is None:
        position_ids = jnp.broadcast_to(
            jnp.arange(past_key_values_length, past_key_values_length + S,
                       dtype=jnp.int32), (B, S))
    if token_type_ids is None:
        token_type_ids = jnp.zeros((B, S), jnp.int32)
    # TODO(synk): the inputs_embeds path of the PyTorch module (precomputed
    # word embeddings instead of input_ids) is not supported by this kernel.

    # Stream order must match the table order used in prepare().
    streams = [input_ids, v_gene_ids, j_gene_ids, token_type_ids, position_ids]
    num_streams = len(streams)
    N = B * S

    # Token tiling: tokens sit on the lane axis, so tiles are multiples of 128.
    # Large tiles amortize per-step overhead; if only one tile would result and
    # there is enough work, halve it so both v7x TensorCores get a tile.
    n_min = _round_up(N, 128)
    tm = min(token_tile, n_min)
    if n_min // tm < 2 and n_min >= 256:
        tm = _round_up((n_min + 1) // 2, 128)
    n_pad = _round_up(N, tm)
    num_tiles = n_pad // tm

    # One (num_streams, N_pad) int32 id array, vocab offsets pre-added.  The
    # padded tail uses -1, which matches no vocab row -> all-zero embedding
    # (LayerNorm on those rows is finite and they are sliced off below).
    ids = jnp.stack([s.reshape(-1).astype(jnp.int32) + off
                     for s, off in zip(streams, offsets)], axis=0)
    ids = jnp.pad(ids, ((0, 0), (0, n_pad - N)), constant_values=-1)

    # gamma/beta replicated across the token (lane) axis; grid-invariant, so
    # Pallas fetches them once.
    gamma = jnp.broadcast_to(prepared["gamma_col"], (H, tm))
    beta = jnp.broadcast_to(prepared["beta_col"], (H, tm))

    grid_spec = pltpu.PrefetchScalarGridSpec(
        num_scalar_prefetch=0,
        grid=(num_tiles, num_k),
        in_specs=[
            pl.BlockSpec((num_streams, tm), lambda t, k: (0, t)),   # ids
            pl.BlockSpec((H, tk), lambda t, k: (0, k)),             # fused table
            pl.BlockSpec((H, tm), lambda t, k: (0, 0)),             # gamma
            pl.BlockSpec((H, tm), lambda t, k: (0, 0)),             # beta
        ],
        out_specs=pl.BlockSpec((H, tm), lambda t, k: (0, t)),
        scratch_shapes=[pltpu.VMEM((H, tm), jnp.float32)],
    )

    # Trim the scoped-VMEM request to the actual footprint (double-buffered
    # blocks + accumulator) instead of a blanket 32 MiB.
    vmem_bytes = 4 * (2 * 8 * tm          # ids block (5 -> 8 sublanes), x2 buf
                      + 2 * H * tk        # table block, x2
                      + 2 * 2 * H * tm    # gamma + beta, x2
                      + 2 * H * tm        # output block, x2
                      + H * tm)           # accumulator scratch
    vmem_limit = int(min(100 * 2**20, max(4 * 2**20, 2 * vmem_bytes)))

    cost = pl.CostEstimate(
        flops=2 * n_pad * kpad * H + 14 * n_pad * H,
        transcendentals=n_pad,            # one rsqrt per token
        bytes_accessed=(num_streams * n_pad * 4 + H * kpad * 4
                        + 2 * H * tm * 4 + H * n_pad * 4),
    )

    out_t = pl.pallas_call(
        functools.partial(_embeddings_kernel, eps, num_streams),
        out_shape=jax.ShapeDtypeStruct((H, n_pad), out_dtype),
        grid_spec=grid_spec,
        compiler_params=pltpu.CompilerParams(
            dimension_semantics=("parallel", "arbitrary"),
            vmem_limit_bytes=vmem_limit),
        cost_estimate=cost,
    )(ids, table_t, gamma, beta)

    # Layout plumbing back to (B, S, H); XLA fuses the slice+transpose+reshape.
    # TODO(synk): for production configs with H >= 128 a row-major
    # (tokens-on-sublanes) variant is already lane-dense and avoids this
    # transpose.
    return out_t[:, :N].T.reshape(B, S, H)


def _reference(input_ids, token_type_ids, position_ids, v_gene_ids, j_gene_ids,
               params, eps=1e-12):
    x = (params["word"][input_ids]
         + params["v_gene"][v_gene_ids]
         + params["j_gene"][j_gene_ids]
         + params["type"][token_type_ids]
         + params["pos"][position_ids])
    mean = jnp.mean(x, axis=-1, keepdims=True)
    var = jnp.mean((x - mean) ** 2, axis=-1, keepdims=True)
    return (x - mean) * lax.rsqrt(var + eps) * params["gamma"] + params["beta"]


if __name__ == "__main__":
    # Small synthetic config (matches the module's toy sizes).
    vocab_size = 32
    hidden_size = 32
    max_position_embeddings = 40
    type_vocab_size = 2
    pad_token_id = 0
    layer_norm_eps = 1e-12

    key = jax.random.PRNGKey(0)
    ks = jax.random.split(key, 8)

    def emb_table(k, n, h, pad_idx=None):
        w = 0.02 * jax.random.normal(k, (n, h), dtype=jnp.float32)
        if pad_idx is not None:
            w = w.at[pad_idx].set(0.0)   # padding_idx row zero, like nn.Embedding
        return w

    params = {
        "word":   emb_table(ks[0], vocab_size, hidden_size, pad_token_id),
        "pos":    emb_table(ks[1], max_position_embeddings, hidden_size),
        "type":   emb_table(ks[2], type_vocab_size, hidden_size),
        "v_gene": emb_table(ks[3], 65, hidden_size, 64),
        "j_gene": emb_table(ks[4], 15, hidden_size, 14),
        "gamma":  jnp.ones((hidden_size,), jnp.float32),   # PyTorch LayerNorm default
        "beta":   jnp.zeros((hidden_size,), jnp.float32),
    }

    # Parameter prep is done ONCE (hoisted out of the per-call forward).
    prepared = prepare_bert_tcr_embedding_params(params)

    def run_case(kb, B, S, prep):
        kk = jax.random.split(kb, 3)
        input_ids = jax.random.randint(kk[0], (B, S), 0, vocab_size, dtype=jnp.int32)
        v_gene_ids = jax.random.randint(kk[1], (B, S), 0, 65, dtype=jnp.int32)
        j_gene_ids = jax.random.randint(kk[2], (B, S), 0, 15, dtype=jnp.int32)
        token_type_ids = jnp.zeros((B, S), jnp.int32)
        position_ids = jnp.broadcast_to(jnp.arange(S, dtype=jnp.int32), (B, S))
        out = bert_tcr_embeddings(input_ids, token_type_ids, position_ids,
                                  v_gene_ids, j_gene_ids, prep,
                                  eps=layer_norm_eps)
        out = jax.block_until_ready(out)
        ref = _reference(input_ids, token_type_ids, position_ids,
                         v_gene_ids, j_gene_ids, params, layer_norm_eps)
        assert out.shape == (B, S, hidden_size)
        assert jnp.allclose(out, ref, atol=1e-5, rtol=1e-5), "mismatch vs reference"

    # Primary small case (single grid step).
    run_case(ks[5], 2, 8, prepared)

    # Multi token-tile + multi K-tile case: exercises the VMEM accumulator,
    # the -1 tail padding and the >=2-tiles megacore split.
    prepared_k128 = prepare_bert_tcr_embedding_params(params, k_tile=128)
    run_case(ks[6], 8, 32, prepared_k128)

    print("KERNEL_OK")
</pallas_src>

<mosaic_0001>
module attributes {stable_mosaic.version = 11 : i64} {
  func.func @_embeddings_kernel(%arg0: i32, %arg1: i32, %arg2: memref<5x128xi32, #tpu.memory_space<vmem>>, %arg3: memref<32x256xf32, #tpu.memory_space<vmem>>, %arg4: memref<32x128xf32, #tpu.memory_space<vmem>>, %arg5: memref<32x128xf32, #tpu.memory_space<vmem>>, %arg6: memref<32x128xf32, #tpu.memory_space<vmem>>, %arg7: memref<32x128xf32, #tpu.memory_space<vmem>>) attributes {dimension_semantics = [#tpu.dimension_semantics<parallel>, #tpu.dimension_semantics<arbitrary>], iteration_bounds = array<i64: 1, 1>, scalar_prefetch = 0 : i64, scratch_operands = 1 : i64, tpu.core_type = #tpu.core_type<tc>, window_params = [{transform_indices = @transform_0, window_bounds = array<i64: 5, 128>}, {transform_indices = @transform_1, window_bounds = array<i64: 32, 256>}, {pipeline_mode = #tpu.pipeline_mode<synchronous>, transform_indices = @transform_2, window_bounds = array<i64: 32, 128>}, {pipeline_mode = #tpu.pipeline_mode<synchronous>, transform_indices = @transform_3, window_bounds = array<i64: 32, 128>}, {transform_indices = @transform_4, window_bounds = array<i64: 32, 128>}]} {
    %c0_i32 = arith.constant 0 : i32
    %0 = arith.cmpi eq, %arg1, %c0_i32 : i32
    %1 = arith.extui %0 : i1 to i32
    %c0_i32_0 = arith.constant 0 : i32
    %2 = arith.cmpi ne, %1, %c0_i32_0 : i32
    scf.if %2 {
      %cst_14 = arith.constant 0.000000e+00 : f32
      %36 = vector.broadcast %cst_14 : f32 to vector<32x128xf32>
      %c0_15 = arith.constant 0 : index
      %c0_16 = arith.constant 0 : index
      %37 = vector.load %arg7[%c0_15, %c0_16] : memref<32x128xf32, #tpu.memory_space<vmem>>, vector<32x128xf32>
      tpu.vector_store %arg7[%c0_15, %c0_16], %36 {strides = array<i32>} : memref<32x128xf32, #tpu.memory_space<vmem>>, vector<32x128xf32>,
    } else {
    }
    %3 = tpu.iota {dimensions = array<i32: 0>} : vector<256x128xi32>
    %c256_i32 = arith.constant 256 : i32
    %4 = arith.muli %arg1, %c256_i32 : i32
    %5 = vector.broadcast %4 : i32 to vector<256x128xi32>
    %6 = arith.addi %3, %5 : vector<256x128xi32>
    %c0 = arith.constant 0 : index
    %c0_1 = arith.constant 0 : index
    %7 = vector.load %arg2[%c0, %c0_1] : memref<5x128xi32, #tpu.memory_space<vmem>>, vector<1x128xi32>
    %8 = vector.broadcast %7 : vector<1x128xi32> to vector<256x128xi32>
    %9 = arith.cmpi eq, %8, %6 : vector<256x128xi32>
    %c1 = arith.constant 1 : index
    %c0_2 = arith.constant 0 : index
    %10 = vector.load %arg2[%c1, %c0_2] : memref<5x128xi32, #tpu.memory_space<vmem>>, vector<1x128xi32>
    %11 = vector.broadcast %10 : vector<1x128xi32> to vector<256x128xi32>
    %12 = arith.cmpi eq, %11, %6 : vector<256x128xi32>
    %13 = arith.ori %9, %12 : vector<256x128xi1>
    %c2 = arith.constant 2 : index
    %c0_3 = arith.constant 0 : index
    %14 = vector.load %arg2[%c2, %c0_3] : memref<5x128xi32, #tpu.memory_space<vmem>>, vector<1x128xi32>
    %15 = vector.broadcast %14 : vector<1x128xi32> to vector<256x128xi32>
    %16 = arith.cmpi eq, %15, %6 : vector<256x128xi32>
    %17 = arith.ori %13, %16 : vector<256x128xi1>
    %c3 = arith.constant 3 : index
    %c0_4 = arith.constant 0 : index
    %18 = vector.load %arg2[%c3, %c0_4] : memref<5x128xi32, #tpu.memory_space<vmem>>, vector<1x128xi32>
    %19 = vector.broadcast %18 : vector<1x128xi32> to vector<256x128xi32>
    %20 = arith.cmpi eq, %19, %6 : vector<256x128xi32>
    %21 = arith.ori %17, %20 : vector<256x128xi1>
    %c4 = arith.constant 4 : index
    %c0_5 = arith.constant 0 : index
    %22 = vector.load %arg2[%c4, %c0_5] : memref<5x128xi32, #tpu.memory_space<vmem>>, vector<1x128xi32>
    %23 = vector.broadcast %22 : vector<1x128xi32> to vector<256x128xi32>
    %24 = arith.cmpi eq, %23, %6 : vector<256x128xi32>
    %25 = arith.ori %21, %24 : vector<256x128xi1>
    %c0_6 = arith.constant 0 : index
    %c0_7 = arith.constant 0 : index
    %26 = vector.load %arg7[%c0_6, %c0_7] : memref<32x128xf32, #tpu.memory_space<vmem>>, vector<32x128xf32>
    %c0_8 = arith.constant 0 : index
    %c0_9 = arith.constant 0 : index
    %27 = vector.load %arg3[%c0_8, %c0_9] : memref<32x256xf32, #tpu.memory_space<vmem>>, vector<32x256xf32>
    %28 = arith.extui %25 : vector<256x128xi1> to vector<256x128xi32>
    %29 = arith.sitofp %28 : vector<256x128xi32> to vector<256x128xf32>
    %cst = arith.constant dense<0.000000e+00> : vector<32x128xf32>
    %30 = tpu.matmul %27, %29, %cst {dimension_numbers = #tpu.dot_dimension_numbers<[1], [0], [0], [1], [0, 0, 1, 1], [], []>} : vector<32x256xf32>, vector<256x128xf32>, vector<32x128xf32> -> vector<32x128xf32>
    %31 = arith.addf %26, %30 : vector<32x128xf32>
    %c0_10 = arith.constant 0 : index
    %c0_11 = arith.constant 0 : index
    %32 = vector.load %arg7[%c0_10, %c0_11] : memref<32x128xf32, #tpu.memory_space<vmem>>, vector<32x128xf32>
    tpu.vector_store %arg7[%c0_10, %c0_11], %31 {strides = array<i32>} : memref<32x128xf32, #tpu.memory_space<vmem>>, vector<32x128xf32>,
    %c0_i32_12 = arith.constant 0 : i32
    %33 = arith.cmpi eq, %arg1, %c0_i32_12 : i32
    %34 = arith.extui %33 : i1 to i32
    %c0_i32_13 = arith.constant 0 : i32
    %35 = arith.cmpi ne, %34, %c0_i32_13 : i32
    scf.if %35 {
      %c0_14 = arith.constant 0 : index
      %c0_15 = arith.constant 0 : index
      %36 = vector.load %arg7[%c0_14, %c0_15] : memref<32x128xf32, #tpu.memory_space<vmem>>, vector<32x128xf32>
      %cst_16 = arith.constant 3.125000e-02 : f32
      %37 = vector.broadcast %cst_16 : f32 to vector<8x32xf32>
      %cst_17 = arith.constant dense<0.000000e+00> : vector<8x128xf32>
      %38 = tpu.matmul %37, %36, %cst_17 {dimension_numbers = #tpu.dot_dimension_numbers<[1], [0], [0], [1], [0, 0, 1, 1], [], []>} : vector<8x32xf32>, vector<32x128xf32>, vector<8x128xf32> -> vector<8x128xf32>
      %39 = vector.extract_strided_slice %38 {offsets = [0, 0], sizes = [1, 128], strides = [1, 1]} : vector<8x128xf32> to vector<1x128xf32>
      %40 = vector.broadcast %39 : vector<1x128xf32> to vector<32x128xf32>
      %41 = arith.subf %36, %40 : vector<32x128xf32>
      %42 = arith.mulf %41, %41 : vector<32x128xf32>
      %cst_18 = arith.constant dense<0.000000e+00> : vector<8x128xf32>
      %43 = tpu.matmul %37, %42, %cst_18 {dimension_numbers = #tpu.dot_dimension_numbers<[1], [0], [0], [1], [0, 0, 1, 1], [], []>} : vector<8x32xf32>, vector<32x128xf32>, vector<8x128xf32> -> vector<8x128xf32>
      %44 = vector.extract_strided_slice %43 {offsets = [0, 0], sizes = [1, 128], strides = [1, 1]} : vector<8x128xf32> to vector<1x128xf32>
      %cst_19 = arith.constant 9.99999996E-13 : f32
      %45 = vector.broadcast %cst_19 : f32 to vector<1x128xf32>
      %46 = arith.addf %44, %45 : vector<1x128xf32>
      %47 = math.rsqrt %46 : vector<1x128xf32>
      %48 = vector.broadcast %47 : vector<1x128xf32> to vector<32x128xf32>
      %49 = arith.mulf %41, %48 : vector<32x128xf32>
      %c0_20 = arith.constant 0 : index
      %c0_21 = arith.constant 0 : index
      %50 = vector.load %arg4[%c0_20, %c0_21] : memref<32x128xf32, #tpu.memory_space<vmem>>, vector<32x128xf32>
      %51 = arith.mulf %49, %50 : vector<32x128xf32>
      %c0_22 = arith.constant 0 : index
      %c0_23 = arith.constant 0 : index
      %52 = vector.load %arg5[%c0_22, %c0_23] : memref<32x128xf32, #tpu.memory_space<vmem>>, vector<32x128xf32>
      %53 = arith.addf %51, %52 : vector<32x128xf32>
      %c0_24 = arith.constant 0 : index
      %c0_25 = arith.constant 0 : index
      %54 = vector.load %arg6[%c0_24, %c0_25] : memref<32x128xf32, #tpu.memory_space<vmem>>, vector<32x128xf32>
      tpu.vector_store %arg6[%c0_24, %c0_25], %53 {strides = array<i32>} : memref<32x128xf32, #tpu.memory_space<vmem>>, vector<32x128xf32>,
    } else {
    }
    return
  }
  func.func @transform_0(%arg0: i32, %arg1: i32) -> (i32, i32) {
    %c0_i32 = arith.constant 0 : i32
    %c0_i32_0 = arith.constant 0 : i32
    return %c0_i32, %arg0 : i32, i32
  }
  func.func @transform_1(%arg0: i32, %arg1: i32) -> (i32, i32) {
    %c0_i32 = arith.constant 0 : i32
    %c0_i32_0 = arith.constant 0 : i32
    return %c0_i32, %arg1 : i32, i32
  }
  func.func @transform_2(%arg0: i32, %arg1: i32) -> (i32, i32) {
    %c0_i32 = arith.constant 0 : i32
    %c0_i32_0 = arith.constant 0 : i32
    %c0_i32_1 = arith.constant 0 : i32
    return %c0_i32, %c0_i32_0 : i32, i32
  }
  func.func @transform_3(%arg0: i32, %arg1: i32) -> (i32, i32) {
    %c0_i32 = arith.constant 0 : i32
    %c0_i32_0 = arith.constant 0 : i32
    %c0_i32_1 = arith.constant 0 : i32
    return %c0_i32, %c0_i32_0 : i32, i32
  }
  func.func @transform_4(%arg0: i32, %arg1: i32) -> (i32, i32) {
    %c0_i32 = arith.constant 0 : i32
    %c0_i32_0 = arith.constant 0 : i32
    return %c0_i32, %arg0 : i32, i32
  }
}

</mosaic_0001>

<bundles_post_ra>
// kernel: tpu_custom_call.1
= control target key start
LH: loop header
LB: loop body
LE: loop exit
PB: predicated region body
PF: predicated region fallthrough
CT: control target
= control target key end

     0   :  { %9 = vsyncpa [#allocation4], 0  ;;  %s1486_s0 = inlined_call_operand.hbm [shape: s32[5,128], index: 0, kind: input, shape index: {}]   ;;  %s1487_s1 = inlined_call_operand.hbm [shape: f32[32,256], index: 1, kind: input, shape index: {}]   ;;  %s1488_s2 = inlined_call_operand.hbm [shape: f32[32,128], index: 2, kind: input, shape index: {}]   ;;  %s1489_s3 = inlined_call_operand.hbm [shape: f32[32,128], index: 3, kind: input, shape index: {}]   ;;  %s1490_s4 = inlined_call_operand.hbm [shape: f32[32,128], index: 4, kind: output, shape index: {}]  }
   0x1   :  { %10 = vsyncpa [#allocation7], 0 }
   0x2   :  { %11 = vsyncpa [#allocation10], 0 }
   0x3   :  { %12 = vsyncpa [#allocation5], 0  ;;  %s1132_s15 = smov [#allocation6]   ;;  %s1014_s19 = scalar_lea.hbm %s1487_s1, 1024 }
   0x4   :  { %s28_s16 = sshll.u32 %s1132_s15, 4  ;;  %p1015_p0 = scmp.ne.s32.totalorder %s1487_s1, %s1014_s19  ;;  %s29_s16 = int_to_ptr.vmem [resolvable:$true] %s28_s16 }
   0x5   :  { %p1018_p1 = scmp.lt.u32.totalorder %s1014_s19, %s1487_s1 }
   0x7   :  { %p1020_p2 = pnand %p1018_p1, %p1015_p0 }
   0x9   :  { %1023 = shalt.err (!%p1020_p2)
}
   0xa   :  { %s1024_s24 = scalar_lea.vmem %s29_s16, 1024  ;;  %p1029_p4 = scmp.lt.s32.totalorder %s29_s16, %s29_s16 }
   0xb   :  { %p1025_p3 = scmp.ne.s32.totalorder %s29_s16, %s1024_s24  ;;  %p1030_p5 = scmp.lt.s32.totalorder %s1024_s24, %s1024_s24 }
   0xd   :  { %p1031_p6 = por %p1030_p5, %p1029_p4 }
   0xf   :  { %p1032_p7 = pnand %p1031_p6, %p1025_p3 }
  0x11   :  { %1035 = shalt.err (!%p1032_p7)
}
  0x12   :  { %s1133_s25 = smov 256   ;;  %s1134_s26 = smov 16  }
  0x13   :  { %34 = dma.hbm_to_vmem [thread:$0]  %s1487_s1, 1024, %s29_s16, [#allocation7], %s1133_s25, %s1133_s25, %s1134_s26  }
  0x14   :  { %s1135_s29 = smov [#allocation3]   ;;  %s1136_s5 = smov [#allocation8]  }
  0x15   :  { %s19_s30 = sshll.u32 %s1135_s29, 4  ;;  %s40_s6 = sshll.u32 %s1136_s5, 4  ;;  %s20_s30 = int_to_ptr.vmem [resolvable:$true] %s19_s30  ;;  %s41_s6 = int_to_ptr.vmem [resolvable:$true] %s40_s6 }
  0x16   :  { %s1036_s9 = scalar_lea.hbm %s1486_s0, 128 }
  0x17   :  { %p1037_p8 = scmp.ne.s32.totalorder %s1486_s0, %s1036_s9  ;;  %p1040_p9 = scmp.lt.u32.totalorder %s1036_s9, %s1486_s0 }
  0x19   :  { %p1042_p10 = pnand %p1040_p9, %p1037_p8 }
  0x1b   :  { %1045 = shalt.err (!%p1042_p10)
}
  0x1c   :  { %s1046_s1 = scalar_lea.vmem %s20_s30, 128  ;;  %p1051_p12 = scmp.lt.s32.totalorder %s20_s30, %s20_s30 }
  0x1d   :  { %p1047_p11 = scmp.ne.s32.totalorder %s20_s30, %s1046_s1  ;;  %p1052_p13 = scmp.lt.s32.totalorder %s1046_s1, %s1046_s1 }
  0x1f   :  { %p1053_p0 = por %p1052_p13, %p1051_p12 }
  0x21   :  { %p1054_p1 = pnand %p1053_p0, %p1047_p11 }
  0x23   :  { %1057 = shalt.err (!%p1054_p1)
}
  0x24   :  { %22 = dma.hbm_to_vmem [thread:$0]  %s1486_s0, 128, %s20_s30, [#allocation4]  }
  0x25   :  { %s1058_s18 = scalar_lea.hbm %s1488_s2, 512 }
  0x26   :  { %p1059_p2 = scmp.ne.s32.totalorder %s1488_s2, %s1058_s18  ;;  %p1062_p3 = scmp.lt.u32.totalorder %s1058_s18, %s1488_s2 }
  0x28   :  { %p1064_p4 = pnand %p1062_p3, %p1059_p2 }
  0x2a   :  { %1067 = shalt.err (!%p1064_p4)
}
  0x2b   :  { %s1068_s23 = scalar_lea.vmem %s41_s6, 512  ;;  %p1073_p6 = scmp.lt.s32.totalorder %s41_s6, %s41_s6 }
  0x2c   :  { %p1069_p5 = scmp.ne.s32.totalorder %s41_s6, %s1068_s23  ;;  %p1074_p7 = scmp.lt.s32.totalorder %s1068_s23, %s1068_s23 }
  0x2e   :  { %p1075_p8 = por %p1074_p7, %p1073_p6 }
  0x30   :  { %p1076_p9 = pnand %p1075_p8, %p1069_p5 }
  0x32   :  { %1079 = shalt.err (!%p1076_p9)
}
  0x33   :  { %s1137_s0 = smov 128   ;;  %s1138_s24 = smov 8  }
  0x34   :  { %46 = dma.hbm_to_vmem [thread:$0]  %s1488_s2, 512, %s41_s6, [#allocation7], %s1137_s0, %s1137_s0, %s1138_s24  }
  0x35   :  { %s1139_s27 = smov [#allocation9]   ;;  %s1080_s5 = scalar_lea.hbm %s1489_s3, 512 }
  0x36   :  { %s52_s28 = sshll.u32 %s1139_s27, 4  ;;  %p1081_p10 = scmp.ne.s32.totalorder %s1489_s3, %s1080_s5  ;;  %s53_s28 = int_to_ptr.vmem [resolvable:$true] %s52_s28 }
  0x37   :  { %p1084_p11 = scmp.lt.u32.totalorder %s1080_s5, %s1489_s3 }
  0x39   :  { %p1086_p12 = pnand %p1084_p11, %p1081_p10 }
  0x3b   :  { %1089 = shalt.err (!%p1086_p12)
}
  0x3c   :  { %s1090_s11 = scalar_lea.vmem %s53_s28, 512  ;;  %p1095_p0 = scmp.lt.s32.totalorder %s53_s28, %s53_s28 }
  0x3d   :  { %p1091_p13 = scmp.ne.s32.totalorder %s53_s28, %s1090_s11  ;;  %p1096_p1 = scmp.lt.s32.totalorder %s1090_s11, %s1090_s11 }
  0x3f   :  { %p1097_p2 = por %p1096_p1, %p1095_p0 }
  0x41   :  { %p1098_p3 = pnand %p1097_p2, %p1091_p13 }
  0x43   :  { %1101 = shalt.err (!%p1098_p3)
}
  0x44   :  { %58 = dma.hbm_to_vmem [thread:$0]  %s1489_s3, 512, %s53_s28, [#allocation10], %s1137_s0, %s1137_s0, %s1138_s24  }
  0x45   :  { %1124 = dma.done.wait [#allocation4], 128  }
  0x46   :  { %1125 = vsyncadd [#allocation4], 4294967168 }
  0x47   :  { %1126 = dma.done.wait [#allocation7], 1536  }
  0x48   :  { %1127 = vsyncadd [#allocation7], 4294965760 }
  0x49   :  { %1128 = dma.done.wait [#allocation10], 512  }
  0x4a   :  { %1129 = vsyncadd [#allocation10], 4294966784  ;;  %v79_v0 = vlaneseq  ;;  %v1228_v4 = vld [vmem:[#allocation3] ss:$0 sm:$0xff]  ;;  %v1230_v5 = vld [vmem:[#allocation3 + $0x1] ss:$0 sm:$0xff] }
  0x4b   :  { %v1232_v6 = vld [vmem:[#allocation3 + $0x2] ss:$0 sm:$0xff]  ;;  %v1238_v7 = vld [vmem:[#allocation3 + $0x3] ss:$0 sm:$0xff]  ;;  %v1242_v8 = vld [vmem:[#allocation3 + $0x4] ss:$0 sm:$0xff] }
  0x4c   :  { %v1224_v1 = vshrl.u32 %v79_v0, 7  ;;  %v464_v10 = vld [vmem:[#allocation6 + $0x8] sm:$0xff]  ;;  %v1140_v11 = vmov 0.0   ;;  %s1144_s3 = smov [#allocation11]  }
  0x4d   :  { %599 = vmatprep.mubr.f32.mxu0 %v464_v10  ;;  %s826_s12 = sshll.u32 %s1144_s3, 4  ;;  %s827_s12 = int_to_ptr.vmem [resolvable:$true] %s826_s12 }
  0x4e   :  { %v96_v2 = vadd.s32 128, %v1224_v1  ;;  %v97_v3 = vadd.s32 136, %v1224_v1  ;;  %v81_v9 = vadd.s32 8, %v1224_v1  ;;  %v98_v15 = vadd.s32 144, %v1224_v1  ;;  %s1102_s13 = scalar_lea.vmem %s827_s12, 512  ;;  %p1107_p5 = scmp.lt.s32.totalorder %s827_s12, %s827_s12 }
  0x4f   :  { %v99_v16 = vadd.s32 152, %v1224_v1  ;;  %v82_v20 = vadd.s32 16, %v1224_v1  ;;  %v83_v21 = vadd.s32 24, %v1224_v1  ;;  %v100_v25 = vadd.s32 160, %v1224_v1  ;;  %p1103_p4 = scmp.ne.s32.totalorder %s827_s12, %s1102_s13  ;;  %p1108_p6 = scmp.lt.s32.totalorder %s1102_s13, %s1102_s13 }
  0x50   :  { %vm167_vm0 = vcmp.eq.s32.totalorder %v1228_v4, %v96_v2  ;;  %vm168_vm1 = vcmp.eq.s32.totalorder %v1228_v4, %v97_v3  ;;  %vm204_vm2 = vcmp.eq.s32.totalorder %v1230_v5, %v96_v2  ;;  %vm205_vm3 = vcmp.eq.s32.totalorder %v1230_v5, %v97_v3 }
  0x51   :  { %vm236_vm4 = vmor %vm167_vm0, %vm204_vm2  ;;  %vm273_vm5 = vcmp.eq.s32.totalorder %v1232_v6, %v96_v2  ;;  %vm274_vm6 = vcmp.eq.s32.totalorder %v1232_v6, %v97_v3  ;;  %vm342_vm8 = vcmp.eq.s32.totalorder %v1238_v7, %v96_v2  ;;  %vm343_vm10 = vcmp.eq.s32.totalorder %v1238_v7, %v97_v3  ;;  %p1109_p7 = por %p1108_p6, %p1107_p5 }
  0x52   :  { %vm237_vm7 = vmor %vm168_vm1, %vm205_vm3  ;;  %vm411_vm12 = vcmp.eq.s32.totalorder %v1242_v8, %v96_v2  ;;  %vm412_vm14 = vcmp.eq.s32.totalorder %v1242_v8, %v97_v3  ;;  %vm151_vm0 = vcmp.eq.s32.totalorder %v1228_v4, %v1224_v1  ;;  %vm188_vm1 = vcmp.eq.s32.totalorder %v1230_v5, %v1224_v1 }
  0x53   :  { %vm305_vm9 = vmor %vm236_vm4, %vm273_vm5  ;;  %vm152_vm3 = vcmp.eq.s32.totalorder %v1228_v4, %v81_v9  ;;  %vm189_vm4 = vcmp.eq.s32.totalorder %v1230_v5, %v81_v9  ;;  %v101_v26 = vadd.s32 168, %v1224_v1  ;;  %v84_v30 = vadd.s32 32, %v1224_v1  ;;  %p1110_p8 = pnand %p1109_p7, %p1103_p4 }
  0x54   :  { %vm306_vm11 = vmor %vm237_vm7, %vm274_vm6  ;;  %vm257_vm6 = vcmp.eq.s32.totalorder %v1232_v6, %v1224_v1  ;;  %v85_v31 = vadd.s32 40, %v1224_v1  ;;  %v102_v35 = vadd.s32 176, %v1224_v1  ;;  %v103_v36 = vadd.s32 184, %v1224_v1 }
  0x55   :  { %vm374_vm13 = vmor %vm305_vm9, %vm342_vm8  ;;  %vm258_vm8 = vcmp.eq.s32.totalorder %v1232_v6, %v81_v9  ;;  %v86_v40 = vadd.s32 48, %v1224_v1  ;;  %v87_v41 = vadd.s32 56, %v1224_v1  ;;  %v104_v45 = vadd.s32 192, %v1224_v1 }
  0x56   :  { %vm375_vm15 = vmor %vm306_vm11, %vm343_vm10  ;;  %vm326_vm10 = vcmp.eq.s32.totalorder %v1238_v7, %v1224_v1  ;;  %v105_v46 = vadd.s32 200, %v1224_v1  ;;  %v88_v50 = vadd.s32 64, %v1224_v1  ;;  %v89_v51 = vadd.s32 72, %v1224_v1 }
  0x57   :  { %vm443_vm2 = vmor %vm374_vm13, %vm411_vm12  ;;  %vm327_vm12 = vcmp.eq.s32.totalorder %v1238_v7, %v81_v9  ;;  %v106_v55 = vadd.s32 208, %v1224_v1  ;;  %v107_v56 = vadd.s32 216, %v1224_v1  ;;  %v90_v60 = vadd.s32 80, %v1224_v1 }
  0x58   :  { %vm444_vm5 = vmor %vm375_vm15, %vm412_vm14  ;;  %v861_v12 = vsel %vm443_vm2, 1.0, %v1140_v11  ;;  %vm395_vm14 = vcmp.eq.s32.totalorder %v1242_v8, %v1224_v1  ;;  %vm169_vm2 = vcmp.eq.s32.totalorder %v1228_v4, %v98_v15  ;;  %v91_v61 = vadd.s32 88, %v1224_v1 }
  0x59   :  { %v862_v13 = vsel %vm444_vm5, 1.0, %v1140_v11  ;;  %vm220_vm7 = vmor %vm151_vm0, %vm188_vm1  ;;  %vm396_vm0 = vcmp.eq.s32.totalorder %v1242_v8, %v81_v9  ;;  %vm170_vm5 = vcmp.eq.s32.totalorder %v1228_v4, %v99_v16  ;;  %v108_v2 = vadd.s32 224, %v1224_v1 }
  0x5a   :  { %v955_v14 = vpack.c.bf16 %v862_v13, %v861_v12  ;;  %vm221_vm9 = vmor %vm152_vm3, %vm189_vm4  ;;  %vm206_vm3 = vcmp.eq.s32.totalorder %v1230_v5, %v98_v15  ;;  %v109_v3 = vadd.s32 232, %v1224_v1  ;;  %v92_v13 = vadd.s32 96, %v1224_v1 }
  0x5b   :  { %vm289_vm11 = vmor %vm220_vm7, %vm257_vm6  ;;  %vm207_vm6 = vcmp.eq.s32.totalorder %v1230_v5, %v99_v16 }
  0x5c   :  { %956 = vmatprep.subr.bf16.mxu0 %v955_v14  ;;  %vm290_vm13 = vmor %vm221_vm9, %vm258_vm8  ;;  %vm275_vm8 = vcmp.eq.s32.totalorder %v1232_v6, %v98_v15  ;;  %v93_v14 = vadd.s32 104, %v1224_v1 }
  0x5d   :  { %vm358_vm15 = vmor %vm289_vm11, %vm326_vm10  ;;  %vm276_vm10 = vcmp.eq.s32.totalorder %v1232_v6, %v99_v16 }
  0x5e   :  { %vm359_vm1 = vmor %vm290_vm13, %vm327_vm12  ;;  %vm344_vm12 = vcmp.eq.s32.totalorder %v1238_v7, %v98_v15 }
  0x5f   :  { %vm427_vm4 = vmor %vm358_vm15, %vm395_vm14  ;;  %vm345_vm14 = vcmp.eq.s32.totalorder %v1238_v7, %v99_v16 }
  0x60   :  { %vm428_vm7 = vmor %vm359_vm1, %vm396_vm0  ;;  %v845_v17 = vsel %vm427_vm4, 1.0, %v1140_v11  ;;  %vm413_vm0 = vcmp.eq.s32.totalorder %v1242_v8, %v98_v15  ;;  %vm153_vm4 = vcmp.eq.s32.totalorder %v1228_v4, %v82_v20 }
  0x61   :  { %v846_v18 = vsel %vm428_vm7, 1.0, %v1140_v11  ;;  %vm238_vm9 = vmor %vm169_vm2, %vm206_vm3  ;;  %vm414_vm2 = vcmp.eq.s32.totalorder %v1242_v8, %v99_v16  ;;  %vm154_vm7 = vcmp.eq.s32.totalorder %v1228_v4, %v83_v21 }
  0x62   :  { %v957_v19 = vpack.c.bf16 %v846_v18, %v845_v17  ;;  %vm239_vm11 = vmor %vm170_vm5, %vm207_vm6  ;;  %vm190_vm5 = vcmp.eq.s32.totalorder %v1230_v5, %v82_v20  ;;  %v110_v18 = vadd.s32 240, %v1224_v1 }
  0x63   :  { %vm307_vm13 = vmor %vm238_vm9, %vm275_vm8  ;;  %vm191_vm8 = vcmp.eq.s32.totalorder %v1230_v5, %v83_v21 }
  0x64   :  { %958 = vmatpush3.bf16.msra.mxu0 %v957_v19  ;;  %vm308_vm15 = vmor %vm239_vm11, %vm276_vm10  ;;  %vm259_vm10 = vcmp.eq.s32.totalorder %v1232_v6, %v82_v20  ;;  %v111_v19 = vadd.s32 248, %v1224_v1 }
  0x65   :  { %vm376_vm1 = vmor %vm307_vm13, %vm344_vm12  ;;  %vm260_vm12 = vcmp.eq.s32.totalorder %v1232_v6, %v83_v21 }
  0x66   :  { %vm377_vm3 = vmor %vm308_vm15, %vm345_vm14  ;;  %vm328_vm14 = vcmp.eq.s32.totalorder %v1238_v7, %v82_v20 }
  0x67   :  { %vm445_vm6 = vmor %vm376_vm1, %vm413_vm0  ;;  %vm329_vm0 = vcmp.eq.s32.totalorder %v1238_v7, %v83_v21 }
  0x68   :  { %vm446_vm9 = vmor %vm377_vm3, %vm414_vm2  ;;  %v863_v22 = vsel %vm445_vm6, 1.0, %v1140_v11  ;;  %vm397_vm2 = vcmp.eq.s32.totalorder %v1242_v8, %v82_v20  ;;  %vm171_vm6 = vcmp.eq.s32.totalorder %v1228_v4, %v100_v25 }
  0x69   :  { %v864_v23 = vsel %vm446_vm9, 1.0, %v1140_v11  ;;  %vm222_vm11 = vmor %vm153_vm4, %vm190_vm5  ;;  %vm398_vm4 = vcmp.eq.s32.totalorder %v1242_v8, %v83_v21  ;;  %vm172_vm9 = vcmp.eq.s32.totalorder %v1228_v4, %v101_v26 }
  0x6a   :  { %v959_v24 = vpack.c.bf16 %v864_v23, %v863_v22  ;;  %vm223_vm13 = vmor %vm154_vm7, %vm191_vm8  ;;  %vm208_vm7 = vcmp.eq.s32.totalorder %v1230_v5, %v100_v25  ;;  %v94_v23 = vadd.s32 112, %v1224_v1 }
  0x6b   :  { %vm291_vm15 = vmor %vm222_vm11, %vm259_vm10  ;;  %vm209_vm10 = vcmp.eq.s32.totalorder %v1230_v5, %v101_v26 }
  0x6c   :  { %960 = vmatprep.subr.bf16.mxu0 %v959_v24  ;;  %vm292_vm1 = vmor %vm223_vm13, %vm260_vm12  ;;  %vm277_vm12 = vcmp.eq.s32.totalorder %v1232_v6, %v100_v25  ;;  %v95_v24 = vadd.s32 120, %v1224_v1 }
  0x6d   :  { %vm360_vm3 = vmor %vm291_vm15, %vm328_vm14  ;;  %vm278_vm14 = vcmp.eq.s32.totalorder %v1232_v6, %v101_v26 }
  0x6e   :  { %vm361_vm5 = vmor %vm292_vm1, %vm329_vm0  ;;  %vm346_vm0 = vcmp.eq.s32.totalorder %v1238_v7, %v100_v25 }
  0x6f   :  { %vm429_vm8 = vmor %vm360_vm3, %vm397_vm2  ;;  %vm347_vm2 = vcmp.eq.s32.totalorder %v1238_v7, %v101_v26 }
  0x70   :  { %vm430_vm11 = vmor %vm361_vm5, %vm398_vm4  ;;  %v847_v27 = vsel %vm429_vm8, 1.0, %v1140_v11  ;;  %vm415_vm4 = vcmp.eq.s32.totalorder %v1242_v8, %v100_v25  ;;  %vm155_vm8 = vcmp.eq.s32.totalorder %v1228_v4, %v84_v30 }
  0x71   :  { %v848_v28 = vsel %vm430_vm11, 1.0, %v1140_v11  ;;  %vm240_vm13 = vmor %vm171_vm6, %vm208_vm7  ;;  %vm416_vm6 = vcmp.eq.s32.totalorder %v1242_v8, %v101_v26  ;;  %vm156_vm11 = vcmp.eq.s32.totalorder %v1228_v4, %v85_v31 }
  0x72   :  { %v961_v29 = vpack.c.bf16 %v848_v28, %v847_v27  ;;  %vm241_vm15 = vmor %vm172_vm9, %vm209_vm10  ;;  %vm192_vm9 = vcmp.eq.s32.totalorder %v1230_v5, %v84_v30  ;;  %v463_v28 = vld [vmem:[#allocation6] sm:$0xff] }
  0x73   :  { %vm309_vm1 = vmor %vm240_vm13, %vm277_vm12  ;;  %vm193_vm12 = vcmp.eq.s32.totalorder %v1230_v5, %v85_v31 }
  0x74   :  { %962 = vmatpush3.bf16.msra.mxu0 %v961_v29  ;;  %vm310_vm3 = vmor %vm241_vm15, %vm278_vm14  ;;  %vm261_vm14 = vcmp.eq.s32.totalorder %v1232_v6, %v84_v30  ;;  %v466_v29 = vld [vmem:[#allocation6 + $0x18] sm:$0xff] }
  0x75   :  { %vm378_vm5 = vmor %vm309_vm1, %vm346_vm0  ;;  %vm262_vm0 = vcmp.eq.s32.totalorder %v1232_v6, %v85_v31 }
  0x76   :  { %vm379_vm7 = vmor %vm310_vm3, %vm347_vm2  ;;  %vm330_vm2 = vcmp.eq.s32.totalorder %v1238_v7, %v84_v30 }
  0x77   :  { %vm447_vm10 = vmor %vm378_vm5, %vm415_vm4  ;;  %vm331_vm4 = vcmp.eq.s32.totalorder %v1238_v7, %v85_v31 }
  0x78   :  { %vm448_vm13 = vmor %vm379_vm7, %vm416_vm6  ;;  %v865_v32 = vsel %vm447_vm10, 1.0, %v1140_v11  ;;  %vm399_vm6 = vcmp.eq.s32.totalorder %v1242_v8, %v84_v30  ;;  %vm173_vm10 = vcmp.eq.s32.totalorder %v1228_v4, %v102_v35  ;;  %v468_v30 = vld [vmem:[#allocation6 + $0x28] sm:$0xff] }
  0x79   :  { %v866_v33 = vsel %vm448_vm13, 1.0, %v1140_v11  ;;  %vm224_vm15 = vmor %vm155_vm8, %vm192_vm9  ;;  %vm400_vm8 = vcmp.eq.s32.totalorder %v1242_v8, %v85_v31  ;;  %vm174_vm13 = vcmp.eq.s32.totalorder %v1228_v4, %v103_v36  ;;  %v467_v31 = vld [vmem:[#allocation6 + $0x20] sm:$0xff] }
  0x7a   :  { %v963_v34 = vpack.c.bf16 %v866_v33, %v865_v32  ;;  %vm225_vm1 = vmor %vm156_vm11, %vm193_vm12  ;;  %vm210_vm11 = vcmp.eq.s32.totalorder %v1230_v5, %v102_v35  ;;  %v470_v32 = vld [vmem:[#allocation6 + $0x38] sm:$0xff]  ;;  %v1141_v33 = vmov 0.0|0.0  }
  0x7b   :  { %vm293_vm3 = vmor %vm224_vm15, %vm261_vm14  ;;  %vm211_vm14 = vcmp.eq.s32.totalorder %v1230_v5, %v103_v36  ;;  %987 = vmatprep.subr.bf16.mxu1 %v1141_v33 }
  0x7c   :  { %964 = vmatprep.subr.bf16.mxu0 %v963_v34  ;;  %vm294_vm5 = vmor %vm225_vm1, %vm262_vm0  ;;  %vm279_vm0 = vcmp.eq.s32.totalorder %v1232_v6, %v102_v35 }
  0x7d   :  { %vm362_vm7 = vmor %vm293_vm3, %vm330_vm2  ;;  %vm280_vm2 = vcmp.eq.s32.totalorder %v1232_v6, %v103_v36 }
  0x7e   :  { %vm363_vm9 = vmor %vm294_vm5, %vm331_vm4  ;;  %vm348_vm4 = vcmp.eq.s32.totalorder %v1238_v7, %v102_v35 }
  0x7f   :  { %vm431_vm12 = vmor %vm362_vm7, %vm399_vm6  ;;  %vm349_vm6 = vcmp.eq.s32.totalorder %v1238_v7, %v103_v36 }
  0x80   :  { %vm432_vm15 = vmor %vm363_vm9, %vm400_vm8  ;;  %v849_v37 = vsel %vm431_vm12, 1.0, %v1140_v11  ;;  %vm417_vm8 = vcmp.eq.s32.totalorder %v1242_v8, %v102_v35  ;;  %vm157_vm12 = vcmp.eq.s32.totalorder %v1228_v4, %v86_v40 }
  0x81   :  { %v850_v38 = vsel %vm432_vm15, 1.0, %v1140_v11  ;;  %vm242_vm1 = vmor %vm173_vm10, %vm210_vm11  ;;  %vm418_vm10 = vcmp.eq.s32.totalorder %v1242_v8, %v103_v36  ;;  %vm158_vm15 = vcmp.eq.s32.totalorder %v1228_v4, %v87_v41 }
  0x82   :  { %v965_v39 = vpack.c.bf16 %v850_v38, %v849_v37  ;;  %vm243_vm3 = vmor %vm174_vm13, %vm211_vm14  ;;  %vm194_vm13 = vcmp.eq.s32.totalorder %v1230_v5, %v86_v40 }
  0x83   :  { %vm311_vm5 = vmor %vm242_vm1, %vm279_vm0  ;;  %vm195_vm0 = vcmp.eq.s32.totalorder %v1230_v5, %v87_v41 }
  0x84   :  { %966 = vmatpush3.bf16.msra.mxu0 %v965_v39  ;;  %vm312_vm7 = vmor %vm243_vm3, %vm280_vm2  ;;  %vm263_vm2 = vcmp.eq.s32.totalorder %v1232_v6, %v86_v40 }
  0x85   :  { %vm380_vm9 = vmor %vm311_vm5, %vm348_vm4  ;;  %vm264_vm4 = vcmp.eq.s32.totalorder %v1232_v6, %v87_v41 }
  0x86   :  { %vm381_vm11 = vmor %vm312_vm7, %vm349_vm6  ;;  %vm332_vm6 = vcmp.eq.s32.totalorder %v1238_v7, %v86_v40 }
  0x87   :  { %vm449_vm14 = vmor %vm380_vm9, %vm417_vm8  ;;  %vm333_vm8 = vcmp.eq.s32.totalorder %v1238_v7, %v87_v41 }
  0x88   :  { %vm450_vm1 = vmor %vm381_vm11, %vm418_vm10  ;;  %v867_v42 = vsel %vm449_vm14, 1.0, %v1140_v11  ;;  %vm401_vm10 = vcmp.eq.s32.totalorder %v1242_v8, %v86_v40  ;;  %vm175_vm14 = vcmp.eq.s32.totalorder %v1228_v4, %v104_v45 }
  0x89   :  { %v868_v43 = vsel %vm450_vm1, 1.0, %v1140_v11  ;;  %vm226_vm3 = vmor %vm157_vm12, %vm194_vm13  ;;  %vm402_vm12 = vcmp.eq.s32.totalorder %v1242_v8, %v87_v41  ;;  %vm176_vm1 = vcmp.eq.s32.totalorder %v1228_v4, %v105_v46 }
  0x8a   :  { %v967_v44 = vpack.c.bf16 %v868_v43, %v867_v42  ;;  %vm227_vm5 = vmor %vm158_vm15, %vm195_vm0  ;;  %vm212_vm15 = vcmp.eq.s32.totalorder %v1230_v5, %v104_v45 }
  0x8b   :  { %vm295_vm7 = vmor %vm226_vm3, %vm263_vm2  ;;  %vm213_vm2 = vcmp.eq.s32.totalorder %v1230_v5, %v105_v46 }
  0x8c   :  { %968 = vmatprep.subr.bf16.mxu0 %v967_v44  ;;  %vm296_vm9 = vmor %vm227_vm5, %vm264_vm4  ;;  %vm281_vm4 = vcmp.eq.s32.totalorder %v1232_v6, %v104_v45 }
  0x8d   :  { %vm364_vm11 = vmor %vm295_vm7, %vm332_vm6  ;;  %vm282_vm6 = vcmp.eq.s32.totalorder %v1232_v6, %v105_v46 }
  0x8e   :  { %vm365_vm13 = vmor %vm296_vm9, %vm333_vm8  ;;  %vm350_vm8 = vcmp.eq.s32.totalorder %v1238_v7, %v104_v45 }
  0x8f   :  { %vm433_vm0 = vmor %vm364_vm11, %vm401_vm10  ;;  %vm351_vm10 = vcmp.eq.s32.totalorder %v1238_v7, %v105_v46 }
  0x90   :  { %vm434_vm3 = vmor %vm365_vm13, %vm402_vm12  ;;  %v851_v47 = vsel %vm433_vm0, 1.0, %v1140_v11  ;;  %vm419_vm12 = vcmp.eq.s32.totalorder %v1242_v8, %v104_v45  ;;  %vm159_vm0 = vcmp.eq.s32.totalorder %v1228_v4, %v88_v50 }
  0x91   :  { %v852_v48 = vsel %vm434_vm3, 1.0, %v1140_v11  ;;  %vm244_vm5 = vmor %vm175_vm14, %vm212_vm15  ;;  %vm420_vm14 = vcmp.eq.s32.totalorder %v1242_v8, %v105_v46  ;;  %vm160_vm3 = vcmp.eq.s32.totalorder %v1228_v4, %v89_v51 }
  0x92   :  { %v969_v49 = vpack.c.bf16 %v852_v48, %v851_v47  ;;  %vm245_vm7 = vmor %vm176_vm1, %vm213_vm2  ;;  %vm196_vm1 = vcmp.eq.s32.totalorder %v1230_v5, %v88_v50  ;;  %v1143_v48 = vmov 0.03125  }
  0x93   :  { %vm313_vm9 = vmor %vm244_vm5, %vm281_vm4  ;;  %vm197_vm4 = vcmp.eq.s32.totalorder %v1230_v5, %v89_v51 }
  0x94   :  { %970 = vmatpush3.bf16.msra.mxu0 %v969_v49  ;;  %vm314_vm11 = vmor %vm245_vm7, %vm282_vm6  ;;  %vm265_vm6 = vcmp.eq.s32.totalorder %v1232_v6, %v88_v50  ;;  %v711_v49 = vsub.s32 0, %v1224_v1 }
  0x95   :  { %vm382_vm13 = vmor %vm313_vm9, %vm350_vm8  ;;  %vm266_vm8 = vcmp.eq.s32.totalorder %v1232_v6, %v89_v51 }
  0x96   :  { %vm383_vm15 = vmor %vm314_vm11, %vm351_vm10  ;;  %vm334_vm10 = vcmp.eq.s32.totalorder %v1238_v7, %v88_v50 }
  0x97   :  { %vm451_vm2 = vmor %vm382_vm13, %vm419_vm12  ;;  %vm335_vm12 = vcmp.eq.s32.totalorder %v1238_v7, %v89_v51 }
  0x98   :  { %vm452_vm5 = vmor %vm383_vm15, %vm420_vm14  ;;  %v869_v52 = vsel %vm451_vm2, 1.0, %v1140_v11  ;;  %vm403_vm14 = vcmp.eq.s32.totalorder %v1242_v8, %v88_v50  ;;  %vm177_vm2 = vcmp.eq.s32.totalorder %v1228_v4, %v106_v55 }
  0x99   :  { %v870_v53 = vsel %vm452_vm5, 1.0, %v1140_v11  ;;  %vm228_vm7 = vmor %vm159_vm0, %vm196_vm1  ;;  %vm404_vm0 = vcmp.eq.s32.totalorder %v1242_v8, %v89_v51  ;;  %vm178_vm5 = vcmp.eq.s32.totalorder %v1228_v4, %v107_v56 }
  0x9a   :  { %v971_v54 = vpack.c.bf16 %v870_v53, %v869_v52  ;;  %vm229_vm9 = vmor %vm160_vm3, %vm197_vm4  ;;  %vm214_vm3 = vcmp.eq.s32.totalorder %v1230_v5, %v106_v55 }
  0x9b   :  { %vm297_vm11 = vmor %vm228_vm7, %vm265_vm6  ;;  %vm215_vm6 = vcmp.eq.s32.totalorder %v1230_v5, %v107_v56 }
  0x9c   :  { %972 = vmatprep.subr.bf16.mxu0 %v971_v54  ;;  %vm298_vm13 = vmor %vm229_vm9, %vm266_vm8  ;;  %vm283_vm8 = vcmp.eq.s32.totalorder %v1232_v6, %v106_v55 }
  0x9d   :  { %vm366_vm15 = vmor %vm297_vm11, %vm334_vm10  ;;  %vm284_vm10 = vcmp.eq.s32.totalorder %v1232_v6, %v107_v56 }
  0x9e   :  { %vm367_vm1 = vmor %vm298_vm13, %vm335_vm12  ;;  %vm352_vm12 = vcmp.eq.s32.totalorder %v1238_v7, %v106_v55 }
  0x9f   :  { %vm435_vm4 = vmor %vm366_vm15, %vm403_vm14  ;;  %vm353_vm14 = vcmp.eq.s32.totalorder %v1238_v7, %v107_v56 }
  0xa0   :  { %vm436_vm7 = vmor %vm367_vm1, %vm404_vm0  ;;  %v853_v57 = vsel %vm435_vm4, 1.0, %v1140_v11  ;;  %vm421_vm0 = vcmp.eq.s32.totalorder %v1242_v8, %v106_v55  ;;  %vm161_vm4 = vcmp.eq.s32.totalorder %v1228_v4, %v90_v60 }
  0xa1   :  { %v854_v58 = vsel %vm436_vm7, 1.0, %v1140_v11  ;;  %vm246_vm9 = vmor %vm177_vm2, %vm214_vm3  ;;  %vm422_vm2 = vcmp.eq.s32.totalorder %v1242_v8, %v107_v56  ;;  %vm162_vm7 = vcmp.eq.s32.totalorder %v1228_v4, %v91_v61 }
  0xa2   :  { %v973_v59 = vpack.c.bf16 %v854_v58, %v853_v57  ;;  %vm247_vm11 = vmor %vm178_vm5, %vm215_vm6  ;;  %vm198_vm5 = vcmp.eq.s32.totalorder %v1230_v5, %v90_v60 }
  0xa3   :  { %vm315_vm13 = vmor %vm246_vm9, %vm283_vm8  ;;  %vm199_vm8 = vcmp.eq.s32.totalorder %v1230_v5, %v91_v61 }
  0xa4   :  { %974 = vmatpush3.bf16.msra.mxu0 %v973_v59  ;;  %vm316_vm15 = vmor %vm247_vm11, %vm284_vm10  ;;  %vm267_vm10 = vcmp.eq.s32.totalorder %v1232_v6, %v90_v60 }
  0xa5   :  { %vm384_vm1 = vmor %vm315_vm13, %vm352_vm12  ;;  %vm268_vm12 = vcmp.eq.s32.totalorder %v1232_v6, %v91_v61 }
  0xa6   :  { %vm385_vm3 = vmor %vm316_vm15, %vm353_vm14  ;;  %vm336_vm14 = vcmp.eq.s32.totalorder %v1238_v7, %v90_v60 }
  0xa7   :  { %vm453_vm6 = vmor %vm384_vm1, %vm421_vm0  ;;  %vm337_vm0 = vcmp.eq.s32.totalorder %v1238_v7, %v91_v61 }
  0xa8   :  { %vm454_vm9 = vmor %vm385_vm3, %vm422_vm2  ;;  %v871_v62 = vsel %vm453_vm6, 1.0, %v1140_v11  ;;  %vm405_vm2 = vcmp.eq.s32.totalorder %v1242_v8, %v90_v60  ;;  %vm179_vm6 = vcmp.eq.s32.totalorder %v1228_v4, %v108_v2 }
  0xa9   :  { %v872_v63 = vsel %vm454_vm9, 1.0, %v1140_v11  ;;  %vm230_vm11 = vmor %vm161_vm4, %vm198_vm5  ;;  %vm406_vm4 = vcmp.eq.s32.totalorder %v1242_v8, %v91_v61  ;;  %vm180_vm9 = vcmp.eq.s32.totalorder %v1228_v4, %v109_v3 }
  0xaa   :  { %v975_v0 = vpack.c.bf16 %v872_v63, %v871_v62  ;;  %vm231_vm13 = vmor %vm162_vm7, %vm199_vm8  ;;  %vm216_vm7 = vcmp.eq.s32.totalorder %v1230_v5, %v108_v2 }
  0xab   :  { %vm299_vm15 = vmor %vm230_vm11, %vm267_vm10  ;;  %vm217_vm10 = vcmp.eq.s32.totalorder %v1230_v5, %v109_v3 }
  0xac   :  { %976 = vmatprep.subr.bf16.mxu0 %v975_v0  ;;  %vm300_vm1 = vmor %vm231_vm13, %vm268_vm12  ;;  %vm285_vm12 = vcmp.eq.s32.totalorder %v1232_v6, %v108_v2 }
  0xad   :  { %vm368_vm3 = vmor %vm299_vm15, %vm336_vm14  ;;  %vm286_vm14 = vcmp.eq.s32.totalorder %v1232_v6, %v109_v3 }
  0xae   :  { %vm369_vm5 = vmor %vm300_vm1, %vm337_vm0  ;;  %vm354_vm0 = vcmp.eq.s32.totalorder %v1238_v7, %v108_v2 }
  0xaf   :  { %vm437_vm8 = vmor %vm368_vm3, %vm405_vm2  ;;  %vm355_vm2 = vcmp.eq.s32.totalorder %v1238_v7, %v109_v3 }
  0xb0   :  { %vm438_vm11 = vmor %vm369_vm5, %vm406_vm4  ;;  %v855_v9 = vsel %vm437_vm8, 1.0, %v1140_v11  ;;  %vm423_vm4 = vcmp.eq.s32.totalorder %v1242_v8, %v108_v2  ;;  %vm163_vm8 = vcmp.eq.s32.totalorder %v1228_v4, %v92_v13 }
  0xb1   :  { %v856_v10 = vsel %vm438_vm11, 1.0, %v1140_v11  ;;  %vm248_vm13 = vmor %vm179_vm6, %vm216_vm7  ;;  %vm424_vm6 = vcmp.eq.s32.totalorder %v1242_v8, %v109_v3  ;;  %vm164_vm11 = vcmp.eq.s32.totalorder %v1228_v4, %v93_v14  ;;  %v801_v3 = vld [vmem:[#allocation8] sm:$0xff] }
  0xb2   :  { %v977_v12 = vpack.c.bf16 %v856_v10, %v855_v9  ;;  %vm249_vm15 = vmor %vm180_vm9, %vm217_vm10  ;;  %vm200_vm9 = vcmp.eq.s32.totalorder %v1230_v5, %v92_v13  ;;  %v802_v9 = vld [vmem:[#allocation8 + $0x8] sm:$0xff]  ;;  %v803_v10 = vld [vmem:[#allocation8 + $0x10] sm:$0xff] }
  0xb3   :  { %vm317_vm1 = vmor %vm248_vm13, %vm285_vm12  ;;  %vm201_vm12 = vcmp.eq.s32.totalorder %v1230_v5, %v93_v14 }
  0xb4   :  { %978 = vmatpush3.bf16.msra.mxu0 %v977_v12  ;;  %vm318_vm3 = vmor %vm249_vm15, %vm286_vm14  ;;  %vm269_vm14 = vcmp.eq.s32.totalorder %v1232_v6, %v92_v13  ;;  %v804_v12 = vld [vmem:[#allocation8 + $0x18] sm:$0xff] }
  0xb5   :  { %vm386_vm5 = vmor %vm317_vm1, %vm354_vm0  ;;  %vm270_vm0 = vcmp.eq.s32.totalorder %v1232_v6, %v93_v14 }
  0xb6   :  { %vm387_vm7 = vmor %vm318_vm3, %vm355_vm2  ;;  %vm338_vm2 = vcmp.eq.s32.totalorder %v1238_v7, %v92_v13 }
  0xb7   :  { %vm455_vm10 = vmor %vm386_vm5, %vm423_vm4  ;;  %vm339_vm4 = vcmp.eq.s32.totalorder %v1238_v7, %v93_v14 }
  0xb8   :  { %vm456_vm13 = vmor %vm387_vm7, %vm424_vm6  ;;  %v873_v15 = vsel %vm455_vm10, 1.0, %v1140_v11  ;;  %vm407_vm6 = vcmp.eq.s32.totalorder %v1242_v8, %v92_v13  ;;  %vm181_vm10 = vcmp.eq.s32.totalorder %v1228_v4, %v110_v18 }
  0xb9   :  { %v874_v16 = vsel %vm456_vm13, 1.0, %v1140_v11  ;;  %vm232_vm15 = vmor %vm163_vm8, %vm200_vm9  ;;  %vm408_vm8 = vcmp.eq.s32.totalorder %v1242_v8, %v93_v14  ;;  %vm182_vm13 = vcmp.eq.s32.totalorder %v1228_v4, %v111_v19 }
  0xba   :  { %v979_v17 = vpack.c.bf16 %v874_v16, %v873_v15  ;;  %vm233_vm1 = vmor %vm164_vm11, %vm201_vm12  ;;  %vm218_vm11 = vcmp.eq.s32.totalorder %v1230_v5, %v110_v18 }
  0xbb   :  { %vm301_vm3 = vmor %vm232_vm15, %vm269_vm14  ;;  %vm219_vm14 = vcmp.eq.s32.totalorder %v1230_v5, %v111_v19 }
  0xbc   :  { %980 = vmatprep.subr.bf16.mxu0 %v979_v17  ;;  %vm302_vm5 = vmor %vm233_vm1, %vm270_vm0  ;;  %vm287_vm0 = vcmp.eq.s32.totalorder %v1232_v6, %v110_v18  ;;  %v809_v17 = vld [vmem:[#allocation9] sm:$0xff] }
  0xbd   :  { %vm370_vm7 = vmor %vm301_vm3, %vm338_vm2  ;;  %vm288_vm2 = vcmp.eq.s32.totalorder %v1232_v6, %v111_v19 }
  0xbe   :  { %vm371_vm9 = vmor %vm302_vm5, %vm339_vm4  ;;  %vm356_vm4 = vcmp.eq.s32.totalorder %v1238_v7, %v110_v18 }
  0xbf   :  { %vm439_vm12 = vmor %vm370_vm7, %vm407_vm6  ;;  %vm357_vm6 = vcmp.eq.s32.totalorder %v1238_v7, %v111_v19 }
  0xc0   :  { %vm440_vm15 = vmor %vm371_vm9, %vm408_vm8  ;;  %v857_v20 = vsel %vm439_vm12, 1.0, %v1140_v11  ;;  %vm425_vm8 = vcmp.eq.s32.totalorder %v1242_v8, %v110_v18  ;;  %vm165_vm12 = vcmp.eq.s32.totalorder %v1228_v4, %v94_v23  ;;  %v810_v18 = vld [vmem:[#allocation9 + $0x8] sm:$0xff] }
  0xc1   :  { %v858_v21 = vsel %vm440_vm15, 1.0, %v1140_v11  ;;  %vm250_vm1 = vmor %vm181_vm10, %vm218_vm11  ;;  %vm426_vm10 = vcmp.eq.s32.totalorder %v1242_v8, %v111_v19  ;;  %vm166_vm15 = vcmp.eq.s32.totalorder %v1228_v4, %v95_v24  ;;  %v811_v19 = vld [vmem:[#allocation9 + $0x10] sm:$0xff] }
  0xc2   :  { %v981_v22 = vpack.c.bf16 %v858_v21, %v857_v20  ;;  %vm251_vm3 = vmor %vm182_vm13, %vm219_vm14  ;;  %vm202_vm13 = vcmp.eq.s32.totalorder %v1230_v5, %v94_v23  ;;  %v812_v20 = vld [vmem:[#allocation9 + $0x18] sm:$0xff] }
  0xc3   :  { %vm319_vm5 = vmor %vm250_vm1, %vm287_vm0  ;;  %vm203_vm0 = vcmp.eq.s32.totalorder %v1230_v5, %v95_v24 }
  0xc4   :  { %982 = vmatpush3.bf16.msra.mxu0 %v981_v22  ;;  %vm320_vm7 = vmor %vm251_vm3, %vm288_vm2  ;;  %vm271_vm2 = vcmp.eq.s32.totalorder %v1232_v6, %v94_v23 }
  0xc5   :  { %vm388_vm9 = vmor %vm319_vm5, %vm356_vm4  ;;  %vm272_vm4 = vcmp.eq.s32.totalorder %v1232_v6, %v95_v24 }
  0xc6   :  { %vm389_vm11 = vmor %vm320_vm7, %vm357_vm6  ;;  %vm340_vm6 = vcmp.eq.s32.totalorder %v1238_v7, %v94_v23 }
  0xc7   :  { %vm457_vm14 = vmor %vm388_vm9, %vm425_vm8  ;;  %vm341_vm8 = vcmp.eq.s32.totalorder %v1238_v7, %v95_v24  ;;  %v465_v7 = vld [vmem:[#allocation6 + $0x10] sm:$0xff] }
  0xc8   :  { %vm458_vm1 = vmor %vm389_vm11, %vm426_vm10  ;;  %v875_v25 = vsel %vm457_vm14, 1.0, %v1140_v11  ;;  %vm409_vm10 = vcmp.eq.s32.totalorder %v1242_v8, %v94_v23  ;;  %vm410_vm14 = vcmp.eq.s32.totalorder %v1242_v8, %v95_v24  ;;  %v469_v8 = vld [vmem:[#allocation6 + $0x30] sm:$0xff] }
  0xc9   :  { %v876_v26 = vsel %vm458_vm1, 1.0, %v1140_v11  ;;  %vm234_vm3 = vmor %vm165_vm12, %vm202_vm13 }
  0xca   :  { %v983_v27 = vpack.c.bf16 %v876_v26, %v875_v25  ;;  %vm235_vm5 = vmor %vm166_vm15, %vm203_vm0  ;;  %vm1142_vm15 = vmmov 0   ;;  %vm635_vm0 = vcmask 261120  }
  0xcb   :  { %vm303_vm7 = vmor %vm234_vm3, %vm271_vm2  ;;  %941 = vmatprep.mubr.msk.f32.mxu1 %vm1142_vm15, %v1140_v11 }
  0xcc   :  { %984 = vmatprep.subr.bf16.mxu0 %v983_v27  ;;  %vm304_vm9 = vmor %vm235_vm5, %vm272_vm4 }
  0xcd   :  { %vm372_vm11 = vmor %vm303_vm7, %vm340_vm6 }
  0xce   :  { %vm373_vm1 = vmor %vm304_vm9, %vm341_vm8 }
  0xcf   :  { %vm441_vm12 = vmor %vm372_vm11, %vm409_vm10 }
  0xd0   :  { %vm442_vm13 = vmor %vm373_vm1, %vm410_vm14  ;;  %v859_v4 = vsel %vm441_vm12, 1.0, %v1140_v11 }
  0xd1   :  { %v860_v5 = vsel %vm442_vm13, 1.0, %v1140_v11 }
  0xd2   :  { %v985_v6 = vpack.c.bf16 %v860_v5, %v859_v4 }
  0xd4   :  { %986 = vmatpush3.bf16.msra.mxu0 %v985_v6 }
  0xd7   :  { %600 = vmatmul.mubr.f32.vlgmr.msra.gmra.mrb[0].mxu0 %v463_v28 }
  0xd8   :  { %604 = vmatprep.mubr.f32.mxu0 %v466_v29 }
  0xdb   :  { %605 = vmatmul.mubr.f32.gmra.mrb[2].mxu0 %v465_v7 }
  0xdc   :  { %609 = vmatprep.mubr.f32.mxu0 %v468_v30 }
  0xdf   :  { %610 = vmatmul.mubr.f32.gmra.mrb[4].mxu0 %v467_v31 }
  0xe0   :  { %614 = vmatprep.mubr.f32.mxu0 %v470_v32 }
  0xe3   :  { %615 = vmatmul.mubr.f32.gmra.mrb[6].mxu0 %v469_v8 }
 0x1aa   :  { %v911_v34 = vpop.f32.mrb[0].mxu0 }
 0x1ab   :  { %v912_v35 = vpop.f32.mrb[1].mxu0 }
 0x1ac   :  { %v913_v36 = vadd.f32 %v912_v35, %v911_v34 }
 0x1ae   :  { %v914_v37 = vpop.f32.mrb[2].mxu0 }
 0x1af   :  { %v915_v38 = vpop.f32.mrb[3].mxu0 }
 0x1b0   :  { %v916_v39 = vadd.f32 %v915_v38, %v914_v37 }
 0x1b2   :  { %v917_v40 = vpop.f32.mrb[4].mxu0  ;;  %v988_v41 = vpack.c.bf16 %v916_v39, %v913_v36 }
 0x1b3   :  { %v918_v42 = vpop.f32.mrb[5].mxu0 }
 0x1b4   :  { %v919_v43 = vadd.f32 %v918_v42, %v917_v40  ;;  %989 = vmatpush3.bf16.msra.mxu1 %v988_v41 }
 0x1b5   :  { %990 = vmatprep.subr.bf16.mxu1 %v1141_v33 }
 0x1b6   :  { %v920_v44 = vpop.f32.mrb[6].mxu0 }
 0x1b7   :  { %v921_v45 = vpop.f32.mrb[7].mxu0 }
 0x1b8   :  { %v922_v46 = vadd.f32 %v921_v45, %v920_v44 }
 0x1ba   :  { %v991_v47 = vpack.c.bf16 %v922_v46, %v919_v43 }
 0x1bc   :  { %992 = vmatpush3.bf16.msra.mxu1 %v991_v47 }
 0x1bd   :  { %993 = vmatprep.subr.bf16.mxu1 %v1141_v33 }
 0x1bf   :  { %942 = vmatmul.mubr.msk.f32.vlgmr.msra.gmra.mrb[0].mxu1 %vm635_vm0, %v1143_v48 }
 0x1c0   :  { %952 = vmatprep.mubr.msk.f32.mxu1 %vm1142_vm15, %v1140_v11 }
 0x292   :  { %v705_v50 = vpop.f32.mrb[0].mxu1 }
 0x293   :  { %v712_v51 = vrot.slane %v705_v50, %v711_v49  ;;  %v943_v52 = vpop.f32.mrb[1].mxu1 }
 0x295   :  { %v713_v53 = vsub.f32 %v913_v36, %v712_v51  ;;  %v714_v54 = vsub.f32 %v916_v39, %v712_v51  ;;  %v715_v55 = vsub.f32 %v919_v43, %v712_v51  ;;  %v716_v56 = vsub.f32 %v922_v46, %v712_v51 }
 0x297   :  { %v717_v57 = vmul.f32 %v713_v53, %v713_v53  ;;  %v718_v58 = vmul.f32 %v714_v54, %v714_v54  ;;  %v719_v60 = vmul.f32 %v715_v55, %v715_v55  ;;  %v720_v61 = vmul.f32 %v716_v56, %v716_v56 }
 0x299   :  { %v994_v59 = vpack.c.bf16 %v718_v58, %v717_v57  ;;  %v997_v62 = vpack.c.bf16 %v720_v61, %v719_v60 }
 0x29b   :  { %995 = vmatpush3.bf16.msra.mxu1 %v994_v59 }
 0x29c   :  { %996 = vmatprep.subr.bf16.mxu1 %v1141_v33 }
 0x29f   :  { %998 = vmatpush3.bf16.msra.mxu1 %v997_v62 }
 0x2a2   :  { %953 = vmatmul.mubr.msk.f32.vlgmr.msra.gmra.mrb[2].mxu1 %vm635_vm0, %v1143_v48 }
 0x375   :  { %v787_v11 = vpop.f32.mrb[2].mxu1 }
 0x376   :  { %v791_v1 = vadd.f32 1e-12, %v787_v11  ;;  %v954_v63 = vpop.f32.mrb[3].mxu1 }
 0x378   :  { %1012 = vrsqrt.f32 %v791_v1 }
 0x382   :  { %v1013_v0 = vpop.eup %1012 }
 0x383   :  { %v796_v2 = vrot.slane %v1013_v0, %v711_v49 }
 0x385   :  { %v797_v13 = vmul.f32 %v796_v2, %v713_v53  ;;  %v798_v14 = vmul.f32 %v796_v2, %v714_v54  ;;  %v799_v15 = vmul.f32 %v796_v2, %v715_v55  ;;  %v800_v16 = vmul.f32 %v796_v2, %v716_v56 }
 0x387   :  { %v805_v21 = vmul.f32 %v801_v3, %v797_v13  ;;  %v806_v22 = vmul.f32 %v802_v9, %v798_v14  ;;  %v807_v23 = vmul.f32 %v803_v10, %v799_v15  ;;  %v808_v24 = vmul.f32 %v804_v12, %v800_v16 }
 0x389   :  { %v813_v25 = vadd.f32 %v809_v17, %v805_v21  ;;  %v814_v26 = vadd.f32 %v810_v18, %v806_v22  ;;  %v815_v27 = vadd.f32 %v811_v19, %v807_v23  ;;  %v816_v4 = vadd.f32 %v812_v20, %v808_v24 }
 0x38b   :  { %817 = vst [vmem:[#allocation11] sm:$0xff] %v813_v25  ;;  %818 = vst [vmem:[#allocation11 + $0x8] sm:$0xff] %v814_v26 }
 0x38c   :  { %819 = vst [vmem:[#allocation11 + $0x10] sm:$0xff] %v815_v27  ;;  %820 = vst [vmem:[#allocation11 + $0x18] sm:$0xff] %v816_v4 }
 0x38d   :  { %1113 = shalt.err (!%p1110_p8)
}
 0x38e   :  { %s1114_s15 = scalar_lea.hbm %s1490_s4, 512 }
 0x38f   :  { %p1115_p9 = scmp.ne.s32.totalorder %s1490_s4, %s1114_s15  ;;  %p1118_p10 = scmp.lt.u32.totalorder %s1114_s15, %s1490_s4 }
 0x391   :  { %p1120_p11 = pnand %p1118_p10, %p1115_p9 }
 0x393   :  { %1123 = shalt.err (!%p1120_p11)
}
 0x394   :  { %832 = dma.vmem_to_hbm [thread:$0]  %s827_s12, 512, %s1490_s4, [#allocation5], %s1137_s0, %s1137_s0, %s1138_s24  }
 0x395   :  { %1130 = dma.done.wait [#allocation5], 512  }
 0x396   :  { %1131 = vsyncadd [#allocation5], 4294966784 }
 0x397   :  { %836 = vsyncpa [#allocation4], 1 }
 0x398   :  { %837 = vsyncpa [#allocation7], 1 }
 0x399   :  { %838 = vsyncpa [#allocation10], 1 }
 0x39a   :  { %839 = vsyncpa [#allocation5], 1 }

</bundles_post_ra>
